<compile_context>
chip_gen: v7x
topology: tpu7x:2x2x1
jax: 0.10.0
libtpu: 0.0.40
codegen_flags: <defaults>
</compile_context>

<pallas_src>
import jax
import jax.numpy as jnp
from jax.experimental import pallas as pl
from jax.experimental.pallas import tpu as pltpu


def _round_up(x, m):
    return (x + m - 1) // m * m


def _cdiv(a, b):
    return (a + b - 1) // b


def _sublane_multiple(dtype):
    return {4: 8, 2: 16, 1: 32}.get(jnp.dtype(dtype).itemsize, 8)


# --------------------------------------------------------------------------
# Kernels
# --------------------------------------------------------------------------
def _ffn_kernel_scratch(x_ref, w1_ref, b1_ref, w2_ref, b2_ref, o_ref, acc_ref):
    # Narrow output dtype: accumulate in an f32 VMEM scratch, cast at the end.
    k = pl.program_id(1)

    @pl.when(k == 0)
    def _():
        acc_ref[...] = jnp.zeros_like(acc_ref)

    h = jnp.dot(x_ref[...], w1_ref[...], preferred_element_type=jnp.float32)
    h = jnp.maximum(h + b1_ref[...].astype(jnp.float32), 0.0)
    # Dropout (eval mode) == identity.
    acc_ref[...] += jnp.dot(h.astype(w2_ref.dtype), w2_ref[...],
                            preferred_element_type=jnp.float32)

    @pl.when(k == pl.num_programs(1) - 1)
    def _():
        out = acc_ref[...] + b2_ref[...].astype(jnp.float32)
        o_ref[...] = out.astype(o_ref.dtype)


def _ffn_kernel_f32out(x_ref, w1_ref, b1_ref, w2_ref, b2_ref, o_ref):
    # f32 output: the output tile's block index is constant across k, so it
    # stays resident in VMEM — accumulate directly into it (no scratch).
    k = pl.program_id(1)

    @pl.when(k == 0)
    def _():
        o_ref[...] = jnp.zeros_like(o_ref)

    h = jnp.dot(x_ref[...], w1_ref[...], preferred_element_type=jnp.float32)
    h = jnp.maximum(h + b1_ref[...].astype(jnp.float32), 0.0)
    # Dropout (eval mode) == identity.
    o_ref[...] += jnp.dot(h.astype(w2_ref.dtype), w2_ref[...],
                          preferred_element_type=jnp.float32)

    @pl.when(k == pl.num_programs(1) - 1)
    def _():
        o_ref[...] += b2_ref[...].astype(jnp.float32)


# --------------------------------------------------------------------------
# Wrapper
# --------------------------------------------------------------------------
def positionwise_feed_forward(x, w1, b1, w2, b2, *, tm=None, tk_ff=None,
                              weight_buffers=2):
    """x: (batch, seq, d_model). w1: (d_model, d_ff), w2: (d_ff, d_model).

    Weights are stored pre-transposed (in_features, out_features), i.e. the
    kernel computes x @ W + b, equivalent to PyTorch's x @ W.T + b.
    tm / tk_ff default to None -> derived from N, d_ff and the per-core VMEM
    budget of the current TPU generation.
    """
    batch, seq, d_model = x.shape
    d_ff = w1.shape[1]
    n = batch * seq

    x_it = jnp.dtype(x.dtype).itemsize
    w_it = jnp.dtype(w1.dtype).itemsize
    out_dtype = x.dtype
    out_it = jnp.dtype(out_dtype).itemsize
    m_sub = _sublane_multiple(x.dtype)
    use_scratch = jnp.dtype(out_dtype) != jnp.float32

    # ---- d_ff (hidden) tile: 128-multiple, preferably dividing d_ff --------
    d_model_p = _round_up(d_model, 128)
    tk_req = tk_ff if tk_ff is not None else (1024 if d_ff >= 1024 else d_ff)
    tk_req = _round_up(max(tk_req, 128), 128)
    tk_req = min(tk_req, _round_up(d_ff, 128))
    tk_eff = tk_req
    if d_ff % 128 == 0:
        # Largest 128-multiple <= tk_req dividing d_ff -> no weight padding.
        cand = min(tk_req, d_ff)
        while cand > 128 and d_ff % cand != 0:
            cand -= 128
        tk_eff = cand
    d_ff_p = _round_up(d_ff, tk_eff)

    # ---- Per-core VMEM budget (generation-aware) ---------------------------
    try:
        hw_vmem = int(pltpu.get_tpu_info().vmem_capacity_bytes)
    except Exception:
        hw_vmem = 64 * 1024 * 1024               # conservative (v7x per-TC)
    vmem_budget = max(hw_vmem - 8 * 1024 * 1024, 16 * 1024 * 1024)

    # ---- Row tile: big (MXU-bound), VMEM-budget aware, TC-count aware ------
    n_rows = _round_up(n, m_sub)
    tm_req = tm if tm is not None else 1024
    tm_req = _round_up(max(tm_req, m_sub), m_sub)

    if n_rows <= tm_req:
        if n_rows >= 2 * 128:
            # Enough rows for two decent MXU tiles -> split so the "parallel"
            # row axis can occupy both v7x TensorCores.
            tm_eff = _round_up(_cdiv(n, 2), m_sub)
        else:
            tm_eff = n_rows
    else:
        tm_eff = tm_req

    def tile_bytes(tm_, tk_):
        b = 2 * tm_ * d_model_p * x_it                     # x tile (dbl-buf)
        b += 2 * tm_ * d_model_p * out_it                  # out tile
        b += weight_buffers * d_model_p * tk_ * w_it       # w1 slice
        b += weight_buffers * tk_ * d_model_p * w_it       # w2 slice
        b += 2 * (tk_ + d_model_p) * w_it                  # biases
        if use_scratch:
            b += tm_ * d_model_p * 4                       # f32 accumulator
        return b

    # Shrink tiles until the working set fits the per-core VMEM budget.
    while tile_bytes(tm_eff, tk_eff) > vmem_budget:
        if tm_eff > 256:
            tm_eff = _round_up(tm_eff // 2, m_sub)
        elif tk_eff > 256:
            tk_eff = _round_up(tk_eff // 2, 128)
            d_ff_p = _round_up(d_ff, tk_eff)
        elif tm_eff > m_sub:
            tm_eff = _round_up(tm_eff // 2, m_sub)
        else:
            break

    n_p = _round_up(n, tm_eff)
    grid = (n_p // tm_eff, d_ff_p // tk_eff)   # reduction (d_ff) axis last

    # ---- Pad only what is actually needed (weights stay untouched when the
    #      transformer dims are already 128-aligned and tk divides d_ff). ----
    x2d = x.reshape(n, d_model)
    if n_p != n or d_model_p != d_model:
        x2d = jnp.pad(x2d, ((0, n_p - n), (0, d_model_p - d_model)))

    b1_2d = b1.reshape(1, d_ff)
    b2_2d = b2.reshape(1, d_model)
    if d_model_p != d_model or d_ff_p != d_ff:
        # TODO(synk): for production, pre-pad/pre-layout weights once outside
        #             the hot path instead of per-call jnp.pad.
        w1_p = jnp.pad(w1, ((0, d_model_p - d_model), (0, d_ff_p - d_ff)))
        b1_p = jnp.pad(b1_2d, ((0, 0), (0, d_ff_p - d_ff)))
        w2_p = jnp.pad(w2, ((0, d_ff_p - d_ff), (0, d_model_p - d_model)))
        b2_p = jnp.pad(b2_2d, ((0, 0), (0, d_model_p - d_model)))
    else:
        w1_p, b1_p, w2_p, b2_p = w1, b1_2d, w2, b2_2d

    # ---- VMEM limit (never above physical cap) & cost estimate -------------
    tb = tile_bytes(tm_eff, tk_eff)
    vmem_limit = int(min(max(tb * 5 // 4, 32 * 1024 * 1024), vmem_budget))

    flops = 4 * n_p * d_model_p * d_ff_p                    # two matmuls
    bytes_accessed = (x2d.size * x_it
                      + (w1_p.size + w2_p.size) * w_it * grid[0]   # re-streamed
                      + (b1_p.size + b2_p.size) * w_it
                      + n_p * d_model_p * out_it)
    cost = pl.CostEstimate(flops=int(flops), transcendentals=0,
                           bytes_accessed=int(bytes_accessed))

    # ---- BlockSpecs ---------------------------------------------------------
    def wspec(shape, index_map):
        if weight_buffers != 2:
            return pl.BlockSpec(shape, index_map,
                                pipeline_mode=pl.Buffered(weight_buffers))
        return pl.BlockSpec(shape, index_map)

    in_specs = [
        pl.BlockSpec((tm_eff, d_model_p), lambda i, k: (i, 0)),   # x rows
        wspec((d_model_p, tk_eff), lambda i, k: (0, k)),          # w1 slice
        pl.BlockSpec((1, tk_eff), lambda i, k: (0, k)),           # b1 slice
        wspec((tk_eff, d_model_p), lambda i, k: (k, 0)),          # w2 slice
        pl.BlockSpec((1, d_model_p), lambda i, k: (0, 0)),        # b2
    ]
    out_spec = pl.BlockSpec((tm_eff, d_model_p), lambda i, k: (i, 0))

    if use_scratch:
        kernel = _ffn_kernel_scratch
        scratch_shapes = [pltpu.VMEM((tm_eff, d_model_p), jnp.float32)]
    else:
        kernel = _ffn_kernel_f32out
        scratch_shapes = []

    out2d = pl.pallas_call(
        kernel,
        out_shape=jax.ShapeDtypeStruct((n_p, d_model_p), out_dtype),
        grid_spec=pltpu.PrefetchScalarGridSpec(
            num_scalar_prefetch=0,
            grid=grid,
            in_specs=in_specs,
            out_specs=out_spec,
            scratch_shapes=scratch_shapes,
        ),
        compiler_params=pltpu.CompilerParams(
            dimension_semantics=("parallel", "arbitrary"),
            vmem_limit_bytes=vmem_limit,
        ),
        cost_estimate=cost,
    )(x2d, w1_p, b1_p, w2_p, b2_p)

    return out2d[:n, :d_model].reshape(batch, seq, d_model)


# --------------------------------------------------------------------------
# Reference & self-test
# --------------------------------------------------------------------------
def _reference(x, w1, b1, w2, b2):
    h = jnp.maximum(jnp.einsum("bsd,df->bsf", x, w1) + b1, 0.0)
    return jnp.einsum("bsf,fd->bsd", h, w2) + b2


if __name__ == "__main__":
    batch, seq, d_model, d_ff = 2, 8, 32, 64

    key = jax.random.PRNGKey(0)
    kx, k1, k2, k3, k4 = jax.random.split(key, 5)

    x = jax.random.normal(kx, (batch, seq, d_model), dtype=jnp.float32)

    # Deterministic parameter init (matching nn.Linear shapes, pre-transposed).
    w1 = jax.random.normal(k1, (d_model, d_ff), dtype=jnp.float32) * 0.05
    b1 = jax.random.normal(k2, (d_ff,), dtype=jnp.float32) * 0.05
    w2 = jax.random.normal(k3, (d_ff, d_model), dtype=jnp.float32) * 0.05
    b2 = jax.random.normal(k4, (d_model,), dtype=jnp.float32) * 0.05

    out = positionwise_feed_forward(x, w1, b1, w2, b2)
    out = jax.block_until_ready(out)

    ref = _reference(x, w1, b1, w2, b2)
    assert out.shape == (batch, seq, d_model)
    assert jnp.allclose(out, ref, atol=1e-5, rtol=1e-5), "mismatch vs reference"

    print("KERNEL_OK")
</pallas_src>

<mosaic_0001>
module attributes {stable_mosaic.version = 11 : i64} {
  func.func @_ffn_kernel_f32out(%arg0: i32, %arg1: i32, %arg2: memref<16x128xf32, #tpu.memory_space<vmem>>, %arg3: memref<128x128xf32, #tpu.memory_space<vmem>>, %arg4: memref<1x128xf32, #tpu.memory_space<vmem>>, %arg5: memref<128x128xf32, #tpu.memory_space<vmem>>, %arg6: memref<1x128xf32, #tpu.memory_space<vmem>>, %arg7: memref<16x128xf32, #tpu.memory_space<vmem>>) attributes {dimension_semantics = [#tpu.dimension_semantics<parallel>, #tpu.dimension_semantics<arbitrary>], iteration_bounds = array<i64: 1, 1>, scalar_prefetch = 0 : i64, scratch_operands = 0 : i64, tpu.core_type = #tpu.core_type<tc>, window_params = [{transform_indices = @transform_0, window_bounds = array<i64: 16, 128>}, {transform_indices = @transform_1, window_bounds = array<i64: 128, 128>}, {transform_indices = @transform_2, window_bounds = array<i64: 1, 128>}, {transform_indices = @transform_3, window_bounds = array<i64: 128, 128>}, {pipeline_mode = #tpu.pipeline_mode<synchronous>, transform_indices = @transform_4, window_bounds = array<i64: 1, 128>}, {transform_indices = @transform_5, window_bounds = array<i64: 16, 128>}]} {
    %c0_i32 = arith.constant 0 : i32
    %0 = arith.cmpi eq, %arg1, %c0_i32 : i32
    %1 = arith.extui %0 : i1 to i32
    %c0_i32_0 = arith.constant 0 : i32
    %2 = arith.cmpi ne, %1, %c0_i32_0 : i32
    scf.if %2 {
      %cst_16 = arith.constant 0.000000e+00 : f32
      %19 = vector.broadcast %cst_16 : f32 to vector<16x128xf32>
      %c0_17 = arith.constant 0 : index
      %c0_18 = arith.constant 0 : index
      %20 = vector.load %arg7[%c0_17, %c0_18] : memref<16x128xf32, #tpu.memory_space<vmem>>, vector<16x128xf32>
      tpu.vector_store %arg7[%c0_17, %c0_18], %19 {strides = array<i32>} : memref<16x128xf32, #tpu.memory_space<vmem>>, vector<16x128xf32>,
    } else {
    }
    %c0 = arith.constant 0 : index
    %c0_1 = arith.constant 0 : index
    %3 = vector.load %arg2[%c0, %c0_1] : memref<16x128xf32, #tpu.memory_space<vmem>>, vector<16x128xf32>
    %c0_2 = arith.constant 0 : index
    %c0_3 = arith.constant 0 : index
    %4 = vector.load %arg3[%c0_2, %c0_3] : memref<128x128xf32, #tpu.memory_space<vmem>>, vector<128x128xf32>
    %cst = arith.constant dense<0.000000e+00> : vector<16x128xf32>
    %5 = tpu.matmul %3, %4, %cst {dimension_numbers = #tpu.dot_dimension_numbers<[1], [0], [0], [1], [0, 0, 1, 1], [], []>} : vector<16x128xf32>, vector<128x128xf32>, vector<16x128xf32> -> vector<16x128xf32>
    %c0_4 = arith.constant 0 : index
    %c0_5 = arith.constant 0 : index
    %6 = vector.load %arg4[%c0_4, %c0_5] : memref<1x128xf32, #tpu.memory_space<vmem>>, vector<1x128xf32>
    %7 = vector.broadcast %6 : vector<1x128xf32> to vector<16x128xf32>
    %8 = arith.addf %5, %7 : vector<16x128xf32>
    %cst_6 = arith.constant 0.000000e+00 : f32
    %9 = vector.broadcast %cst_6 : f32 to vector<16x128xf32>
    %10 = arith.maximumf %8, %9 : vector<16x128xf32>
    %c0_7 = arith.constant 0 : index
    %c0_8 = arith.constant 0 : index
    %11 = vector.load %arg7[%c0_7, %c0_8] : memref<16x128xf32, #tpu.memory_space<vmem>>, vector<16x128xf32>
    %c0_9 = arith.constant 0 : index
    %c0_10 = arith.constant 0 : index
    %12 = vector.load %arg5[%c0_9, %c0_10] : memref<128x128xf32, #tpu.memory_space<vmem>>, vector<128x128xf32>
    %cst_11 = arith.constant dense<0.000000e+00> : vector<16x128xf32>
    %13 = tpu.matmul %10, %12, %cst_11 {dimension_numbers = #tpu.dot_dimension_numbers<[1], [0], [0], [1], [0, 0, 1, 1], [], []>} : vector<16x128xf32>, vector<128x128xf32>, vector<16x128xf32> -> vector<16x128xf32>
    %14 = arith.addf %11, %13 : vector<16x128xf32>
    %c0_12 = arith.constant 0 : index
    %c0_13 = arith.constant 0 : index
    %15 = vector.load %arg7[%c0_12, %c0_13] : memref<16x128xf32, #tpu.memory_space<vmem>>, vector<16x128xf32>
    tpu.vector_store %arg7[%c0_12, %c0_13], %14 {strides = array<i32>} : memref<16x128xf32, #tpu.memory_space<vmem>>, vector<16x128xf32>,
    %c0_i32_14 = arith.constant 0 : i32
    %16 = arith.cmpi eq, %arg1, %c0_i32_14 : i32
    %17 = arith.extui %16 : i1 to i32
    %c0_i32_15 = arith.constant 0 : i32
    %18 = arith.cmpi ne, %17, %c0_i32_15 : i32
    scf.if %18 {
      %c0_16 = arith.constant 0 : index
      %c0_17 = arith.constant 0 : index
      %19 = vector.load %arg7[%c0_16, %c0_17] : memref<16x128xf32, #tpu.memory_space<vmem>>, vector<16x128xf32>
      %c0_18 = arith.constant 0 : index
      %c0_19 = arith.constant 0 : index
      %20 = vector.load %arg6[%c0_18, %c0_19] : memref<1x128xf32, #tpu.memory_space<vmem>>, vector<1x128xf32>
      %21 = vector.broadcast %20 : vector<1x128xf32> to vector<16x128xf32>
      %22 = arith.addf %19, %21 : vector<16x128xf32>
      %c0_20 = arith.constant 0 : index
      %c0_21 = arith.constant 0 : index
      %23 = vector.load %arg7[%c0_20, %c0_21] : memref<16x128xf32, #tpu.memory_space<vmem>>, vector<16x128xf32>
      tpu.vector_store %arg7[%c0_20, %c0_21], %22 {strides = array<i32>} : memref<16x128xf32, #tpu.memory_space<vmem>>, vector<16x128xf32>,
    } else {
    }
    return
  }
  func.func @transform_0(%arg0: i32, %arg1: i32) -> (i32, i32) {
    %c0_i32 = arith.constant 0 : i32
    %c0_i32_0 = arith.constant 0 : i32
    return %arg0, %c0_i32 : i32, i32
  }
  func.func @transform_1(%arg0: i32, %arg1: i32) -> (i32, i32) {
    %c0_i32 = arith.constant 0 : i32
    %c0_i32_0 = arith.constant 0 : i32
    return %c0_i32, %arg1 : i32, i32
  }
  func.func @transform_2(%arg0: i32, %arg1: i32) -> (i32, i32) {
    %c0_i32 = arith.constant 0 : i32
    %c0_i32_0 = arith.constant 0 : i32
    return %c0_i32, %arg1 : i32, i32
  }
  func.func @transform_3(%arg0: i32, %arg1: i32) -> (i32, i32) {
    %c0_i32 = arith.constant 0 : i32
    %c0_i32_0 = arith.constant 0 : i32
    return %arg1, %c0_i32 : i32, i32
  }
  func.func @transform_4(%arg0: i32, %arg1: i32) -> (i32, i32) {
    %c0_i32 = arith.constant 0 : i32
    %c0_i32_0 = arith.constant 0 : i32
    %c0_i32_1 = arith.constant 0 : i32
    return %c0_i32, %c0_i32_0 : i32, i32
  }
  func.func @transform_5(%arg0: i32, %arg1: i32) -> (i32, i32) {
    %c0_i32 = arith.constant 0 : i32
    %c0_i32_0 = arith.constant 0 : i32
    return %arg0, %c0_i32 : i32, i32
  }
}

</mosaic_0001>

<bundles_post_ra>
// kernel: tpu_custom_call.1
= control target key start
LH: loop header
LB: loop body
LE: loop exit
PB: predicated region body
PF: predicated region fallthrough
CT: control target
= control target key end

     0   :  { %10 = vsyncpa [#allocation3], 0  ;;  %s683_s0 = inlined_call_operand.hbm [shape: f32[16,128], index: 0, kind: input, shape index: {}]   ;;  %s684_s1 = inlined_call_operand.hbm [shape: f32[128,128], index: 1, kind: input, shape index: {}]   ;;  %s685_s2 = inlined_call_operand.vmem [shape: f32[1,128], index: 2, kind: input, shape index: {}]   ;;  %s686_s3 = inlined_call_operand.hbm [shape: f32[128,128], index: 3, kind: input, shape index: {}]   ;;  %s687_s4 = inlined_call_operand.vmem [shape: f32[1,128], index: 4, kind: input, shape index: {}]   ;;  %s688_s5 = inlined_call_operand.hbm [shape: f32[16,128], index: 5, kind: output, shape index: {}]  }
   0x1   :  { %11 = vsyncpa [#allocation6], 0 }
   0x2   :  { %12 = vsyncpa [#allocation4], 0  ;;  %s574_s18 = smov [#allocation5]   ;;  %s575_s20 = smov [#allocation2]  }
   0x3   :  { %s30_s19 = sshll.u32 %s574_s18, 4  ;;  %s18_s21 = sshll.u32 %s575_s20, 4  ;;  %s31_s19 = int_to_ptr.vmem [resolvable:$true] %s30_s19  ;;  %s610_s21 = int_to_ptr.vmem [resolvable:$true] %s18_s21 }
   0x4   :  { %s480_s24 = scalar_lea.hbm %s684_s1, 2048 }
   0x5   :  { %p481_p0 = scmp.ne.s32.totalorder %s684_s1, %s480_s24  ;;  %p484_p1 = scmp.lt.u32.totalorder %s480_s24, %s684_s1 }
   0x7   :  { %p486_p2 = pnand %p484_p1, %p481_p0 }
   0x9   :  { %489 = shalt.err (!%p486_p2)
}
   0xa   :  { %s490_s29 = scalar_lea.vmem %s31_s19, 2048  ;;  %p495_p4 = scmp.lt.s32.totalorder %s31_s19, %s31_s19 }
   0xb   :  { %p491_p3 = scmp.ne.s32.totalorder %s31_s19, %s490_s29  ;;  %p496_p5 = scmp.lt.s32.totalorder %s490_s29, %s490_s29 }
   0xd   :  { %p497_p6 = por %p496_p5, %p495_p4 }
   0xf   :  { %p498_p7 = pnand %p497_p6, %p491_p3 }
  0x11   :  { %501 = shalt.err (!%p498_p7)
}
  0x12   :  { %s576_s30 = smov 128   ;;  %s577_s6 = smov 8  }
  0x13   :  { %36 = dma.hbm_to_vmem [thread:$0]  %s684_s1, 2048, %s31_s19, [#allocation6], %s576_s30, %s576_s30, %s577_s6  }
  0x14   :  { %s502_s11 = scalar_lea.hbm %s683_s0, 256 }
  0x15   :  { %p503_p8 = scmp.ne.s32.totalorder %s683_s0, %s502_s11  ;;  %p506_p9 = scmp.lt.u32.totalorder %s502_s11, %s683_s0 }
  0x17   :  { %p508_p10 = pnand %p506_p9, %p503_p8 }
  0x19   :  { %511 = shalt.err (!%p508_p10)
}
  0x1a   :  { %s512_s16 = scalar_lea.vmem %s610_s21, 256  ;;  %p517_p12 = scmp.lt.s32.totalorder %s610_s21, %s610_s21 }
  0x1b   :  { %p513_p11 = scmp.ne.s32.totalorder %s610_s21, %s512_s16  ;;  %p518_p13 = scmp.lt.s32.totalorder %s512_s16, %s512_s16 }
  0x1d   :  { %p519_p0 = por %p518_p13, %p517_p12 }
  0x1f   :  { %p520_p1 = pnand %p519_p0, %p513_p11 }
  0x21   :  { %523 = shalt.err (!%p520_p1)
}
  0x22   :  { %24 = dma.hbm_to_vmem [thread:$0]  %s683_s0, 256, %s610_s21, [#allocation3], %s576_s30, %s576_s30, %s577_s6  }
  0x23   :  { %s578_s18 = smov [#allocation7]   ;;  %s524_s23 = scalar_lea.hbm %s686_s3, 2048 }
  0x24   :  { %s44_s19 = sshll.u32 %s578_s18, 4  ;;  %p525_p2 = scmp.ne.s32.totalorder %s686_s3, %s524_s23  ;;  %s45_s19 = int_to_ptr.vmem [resolvable:$true] %s44_s19 }
  0x25   :  { %p528_p3 = scmp.lt.u32.totalorder %s524_s23, %s686_s3 }
  0x27   :  { %p530_p4 = pnand %p528_p3, %p525_p2 }
  0x29   :  { %533 = shalt.err (!%p530_p4)
}
  0x2a   :  { %s534_s28 = scalar_lea.vmem %s45_s19, 2048  ;;  %p539_p6 = scmp.lt.s32.totalorder %s45_s19, %s45_s19 }
  0x2b   :  { %p535_p5 = scmp.ne.s32.totalorder %s45_s19, %s534_s28  ;;  %p540_p7 = scmp.lt.s32.totalorder %s534_s28, %s534_s28 }
  0x2d   :  { %p541_p8 = por %p540_p7, %p539_p6 }
  0x2f   :  { %p542_p9 = pnand %p541_p8, %p535_p5 }
  0x31   :  { %545 = shalt.err (!%p542_p9)
}
  0x32   :  { %50 = dma.hbm_to_vmem [thread:$0]  %s686_s3, 2048, %s45_s19, [#allocation6], %s576_s30, %s576_s30, %s577_s6  }
  0x33   :  { %568 = dma.done.wait [#allocation3], 256  }
  0x34   :  { %569 = vsyncadd [#allocation3], 4294967040 }
  0x35   :  { %570 = dma.done.wait [#allocation6], 4096  }
  0x36   :  { %571 = vsyncadd [#allocation6], 4294963200  ;;  %v70_v0 = vld [vmem:[#allocation5] sm:$0xff]  ;;  %v71_v1 = vld [vmem:[#allocation5 + $0x8] sm:$0xff]  ;;  %s579_s9 = smov [#allocation8]  }
  0x37   :  { %v72_v2 = vld [vmem:[#allocation5 + $0x10] sm:$0xff]  ;;  %v409_v3 = vpack.c.bf16 %v71_v1, %v70_v0  ;;  %v73_v4 = vld [vmem:[#allocation5 + $0x18] sm:$0xff]  ;;  %v74_v6 = vld [vmem:[#allocation5 + $0x20] sm:$0xff]  ;;  %s288_s10 = sshll.u32 %s579_s9, 4  ;;  %s289_s10 = int_to_ptr.vmem [resolvable:$true] %s288_s10 }
  0x38   :  { %v413_v5 = vpack.c.bf16 %v73_v4, %v72_v2  ;;  %v75_v7 = vld [vmem:[#allocation5 + $0x28] sm:$0xff]  ;;  %v76_v9 = vld [vmem:[#allocation5 + $0x30] sm:$0xff]  ;;  %v77_v10 = vld [vmem:[#allocation5 + $0x38] sm:$0xff]  ;;  %p551_p11 = scmp.lt.s32.totalorder %s289_s10, %s289_s10 }
  0x39   :  { %410 = vmatprep.subr.bf16.mxu0 %v409_v3  ;;  %v417_v8 = vpack.c.bf16 %v75_v7, %v74_v6  ;;  %v68_v11 = vld [vmem:[#allocation2] sm:$0xff]  ;;  %v172_v12 = vld [vmem:[#allocation7] sm:$0xff]  ;;  %v173_v13 = vld [vmem:[#allocation7 + $0x8] sm:$0xff]  ;;  %v421_v20 = vpack.c.bf16 %v77_v10, %v76_v9 }
  0x3a   :  { %412 = vmatpush3.bf16.msra.mxu0 %v409_v3  ;;  %371 = vmatprep.mubr.f32.mxu0 %v68_v11  ;;  %v174_v14 = vld [vmem:[#allocation7 + $0x10] sm:$0xff]  ;;  %v441_v15 = vpack.c.bf16 %v173_v13, %v172_v12  ;;  %v175_v16 = vld [vmem:[#allocation7 + $0x18] sm:$0xff]  ;;  %v176_v18 = vld [vmem:[#allocation7 + $0x20] sm:$0xff] }
  0x3b   :  { %414 = vmatprep.subr.bf16.mxu0 %v413_v5  ;;  %v445_v17 = vpack.c.bf16 %v175_v16, %v174_v14  ;;  %v177_v19 = vld [vmem:[#allocation7 + $0x28] sm:$0xff]  ;;  %v78_v21 = vld [vmem:[#allocation5 + $0x40] sm:$0xff]  ;;  %v178_v24 = vld [vmem:[#allocation7 + $0x30] sm:$0xff] }
  0x3c   :  { %442 = vmatprep.subr.bf16.mxu1 %v441_v15  ;;  %v79_v22 = vld [vmem:[#allocation5 + $0x48] sm:$0xff]  ;;  %v449_v23 = vpack.c.bf16 %v177_v19, %v176_v18  ;;  %v179_v25 = vld [vmem:[#allocation7 + $0x38] sm:$0xff]  ;;  %v80_v27 = vld [vmem:[#allocation5 + $0x50] sm:$0xff] }
  0x3d   :  { %444 = vmatpush3.bf16.msra.mxu1 %v441_v15  ;;  %v425_v26 = vpack.c.bf16 %v79_v22, %v78_v21  ;;  %v81_v28 = vld [vmem:[#allocation5 + $0x58] sm:$0xff]  ;;  %v453_v29 = vpack.c.bf16 %v179_v25, %v178_v24  ;;  %v180_v30 = vld [vmem:[#allocation7 + $0x40] sm:$0xff]  ;;  %v181_v31 = vld [vmem:[#allocation7 + $0x48] sm:$0xff] }
  0x3e   :  { %416 = vmatpush3.bf16.msra.mxu0 %v413_v5  ;;  %446 = vmatprep.subr.bf16.mxu1 %v445_v17  ;;  %v429_v32 = vpack.c.bf16 %v81_v28, %v80_v27  ;;  %v82_v33 = vld [vmem:[#allocation5 + $0x60] sm:$0xff]  ;;  %v83_v34 = vld [vmem:[#allocation5 + $0x68] sm:$0xff]  ;;  %v457_v35 = vpack.c.bf16 %v181_v31, %v180_v30  ;;  %v182_v36 = vld [vmem:[#allocation7 + $0x50] sm:$0xff] }
  0x3f   :  { %418 = vmatprep.subr.bf16.mxu0 %v417_v8  ;;  %v183_v37 = vld [vmem:[#allocation7 + $0x58] sm:$0xff]  ;;  %v433_v38 = vpack.c.bf16 %v83_v34, %v82_v33  ;;  %v84_v39 = vld [vmem:[#allocation5 + $0x70] sm:$0xff]  ;;  %v184_v42 = vld [vmem:[#allocation7 + $0x60] sm:$0xff] }
  0x40   :  { %v85_v40 = vld [vmem:[#allocation5 + $0x78] sm:$0xff]  ;;  %v461_v41 = vpack.c.bf16 %v183_v37, %v182_v36  ;;  %v185_v43 = vld [vmem:[#allocation7 + $0x68] sm:$0xff]  ;;  %v186_v47 = vld [vmem:[#allocation7 + $0x70] sm:$0xff] }
  0x41   :  { %448 = vmatpush3.bf16.msra.mxu1 %v445_v17  ;;  %v437_v44 = vpack.c.bf16 %v85_v40, %v84_v39  ;;  %v465_v45 = vpack.c.bf16 %v185_v43, %v184_v42  ;;  %v69_v46 = vld [vmem:[#allocation2 + $0x8] sm:$0xff]  ;;  %v301_v50 = vld [vmem:[%s685_s2] ss:$0 sm:$0xff]  ;;  %s546_s2 = scalar_lea.vmem %s289_s10, 256 }
  0x42   :  { %420 = vmatpush3.bf16.msra.mxu0 %v417_v8  ;;  %450 = vmatprep.subr.bf16.mxu1 %v449_v23  ;;  %v187_v48 = vld [vmem:[#allocation7 + $0x78] sm:$0xff]  ;;  %v302_v58 = vld [vmem:[%s687_s4] ss:$0 sm:$0xff]  ;;  %p547_p10 = scmp.ne.s32.totalorder %s289_s10, %s546_s2  ;;  %p552_p12 = scmp.lt.s32.totalorder %s546_s2, %s546_s2 }
  0x43   :  { %422 = vmatprep.subr.bf16.mxu0 %v421_v20  ;;  %v469_v49 = vpack.c.bf16 %v187_v48, %v186_v47 }
  0x44   :  { %p553_p13 = por %p552_p12, %p551_p11 }
  0x45   :  { %452 = vmatpush3.bf16.msra.mxu1 %v449_v23 }
  0x46   :  { %424 = vmatpush3.bf16.msra.mxu0 %v421_v20  ;;  %454 = vmatprep.subr.bf16.mxu1 %v453_v29  ;;  %p554_p0 = pnand %p553_p13, %p547_p10 }
  0x47   :  { %426 = vmatprep.subr.bf16.mxu0 %v425_v26 }
  0x49   :  { %456 = vmatpush3.bf16.msra.mxu1 %v453_v29 }
  0x4a   :  { %428 = vmatpush3.bf16.msra.mxu0 %v425_v26  ;;  %458 = vmatprep.subr.bf16.mxu1 %v457_v35 }
  0x4b   :  { %430 = vmatprep.subr.bf16.mxu0 %v429_v32 }
  0x4d   :  { %460 = vmatpush3.bf16.msra.mxu1 %v457_v35 }
  0x4e   :  { %432 = vmatpush3.bf16.msra.mxu0 %v429_v32  ;;  %462 = vmatprep.subr.bf16.mxu1 %v461_v41 }
  0x4f   :  { %434 = vmatprep.subr.bf16.mxu0 %v433_v38 }
  0x51   :  { %464 = vmatpush3.bf16.msra.mxu1 %v461_v41 }
  0x52   :  { %436 = vmatpush3.bf16.msra.mxu0 %v433_v38  ;;  %466 = vmatprep.subr.bf16.mxu1 %v465_v45 }
  0x53   :  { %438 = vmatprep.subr.bf16.mxu0 %v437_v44 }
  0x55   :  { %468 = vmatpush3.bf16.msra.mxu1 %v465_v45 }
  0x56   :  { %440 = vmatpush3.bf16.msra.mxu0 %v437_v44  ;;  %470 = vmatprep.subr.bf16.mxu1 %v469_v49 }
  0x59   :  { %372 = vmatmul.mubr.f32.vlgmr.msra.gmra.mrb[0].mxu0 %v69_v46  ;;  %472 = vmatpush3.bf16.msra.mxu1 %v469_v49 }
 0x12c   :  { %v373_v51 = vpop.f32.mrb[0].mxu0 }
 0x12d   :  { %v165_v52 = vadd.f32 %v373_v51, %v301_v50  ;;  %v159_v53 = vpop.f32.mrb[1].mxu0 }
 0x12e   :  { %v160_v54 = vadd.f32 %v301_v50, %v159_v53 }
 0x12f   :  { %v169_v56 = vmax.f32 %v165_v52, 0.0 }
 0x130   :  { %v168_v55 = vmax.f32 %v160_v54, 0.0 }
 0x132   :  { %406 = vmatprep.mubr.f32.mxu1 %v168_v55 }
 0x133   :  { %407 = vmatmul.mubr.f32.vlgmr.msra.gmra.mrb[0].mxu1 %v169_v56 }
 0x206   :  { %v408_v57 = vpop.f32.mrb[0].mxu1 }
 0x207   :  { %v254_v59 = vpop.f32.mrb[1].mxu1  ;;  %v280_v60 = vadd.f32 %v408_v57, %v302_v58 }
 0x208   :  { %v279_v61 = vadd.f32 %v302_v58, %v254_v59 }
 0x209   :  { %282 = vst [vmem:[#allocation8 + $0x8] sm:$0xff] %v280_v60 }
 0x20a   :  { %281 = vst [vmem:[#allocation8] sm:$0xff] %v279_v61 }
 0x20b   :  { %557 = shalt.err (!%p554_p0)
}
 0x20c   :  { %s558_s13 = scalar_lea.hbm %s688_s5, 256 }
 0x20d   :  { %p559_p1 = scmp.ne.s32.totalorder %s688_s5, %s558_s13  ;;  %p562_p2 = scmp.lt.u32.totalorder %s558_s13, %s688_s5 }
 0x20f   :  { %p564_p3 = pnand %p562_p2, %p559_p1 }
 0x211   :  { %567 = shalt.err (!%p564_p3)
}
 0x212   :  { %294 = dma.vmem_to_hbm [thread:$0]  %s289_s10, 256, %s688_s5, [#allocation4], %s576_s30, %s576_s30, %s577_s6  }
 0x213   :  { %572 = dma.done.wait [#allocation4], 256  }
 0x214   :  { %573 = vsyncadd [#allocation4], 4294967040 }
 0x215   :  { %298 = vsyncpa [#allocation3], 1 }
 0x216   :  { %299 = vsyncpa [#allocation6], 1 }
 0x217   :  { %300 = vsyncpa [#allocation4], 1 }

</bundles_post_ra>
